<compile_context>
chip_gen: v7x
topology: tpu7x:2x2x1
jax: 0.10.0
libtpu: 0.0.40
codegen_flags: <defaults>
</compile_context>

<pallas_src>
import math
from functools import lru_cache

import jax
import jax.numpy as jnp
from jax.experimental import pallas as pl
from jax.experimental.pallas import tpu as pltpu

_NEG_BIG = -1e30                 # sentinel for "no positive label" in the masked max
_LOG_LO = math.log(1e-6)         # clamp(sigmoid, 1e-6, 1-1e-6) moved to log space
_LOG_HI = math.log1p(-1e-6)
_MAX_TB = 1024                   # rows; past ~512-1024 the per-step overhead is amortized


def _rup(n, m):
    return ((n + m - 1) // m) * m


def _rdown(n, m):
    return (n // m) * m


def _vmem_capacity_bytes():
    """Best-effort per-core VMEM capacity; conservative fallback = v7x (64 MiB)."""
    try:
        info = pltpu.get_tpu_info()
        cap = getattr(info, "vmem_capacity_bytes", None)
        if cap:
            return int(cap)
    except Exception:
        pass
    return 64 * 1024 * 1024


@lru_cache(maxsize=None)
def _make_kernel(has_weights):
    """Kernel over a (batch_tile, class_tile) block with a running-max scratch.

    Grid = (batch_steps, class_steps); class axis (reduction) is last.
    """

    def kernel(*refs):
        if has_weights:
            x_ref, t_ref, w_ref, loss_ref, m_sc = refs
        else:
            x_ref, t_ref, loss_ref, m_sc = refs
            w_ref = None

        k = pl.program_id(1)

        @pl.when(k == 0)
        def _init():
            m_sc[...] = jnp.full(m_sc.shape, _NEG_BIG, m_sc.dtype)

        x = x_ref[...]
        if not jnp.issubdtype(x.dtype, jnp.floating):
            x = x.astype(jnp.float32)          # rare: integer logits
        # Masked max of the RAW logits over positive classes, in the input's
        # native dtype (pure selection -> identical to f32 math); only the
        # reduced (tb, 1) column is upcast to f32.
        masked = jnp.where(t_ref[...] > 0, x, jnp.asarray(_NEG_BIG, x.dtype))
        blk_max = jnp.max(masked, axis=1, keepdims=True).astype(jnp.float32)
        m_sc[...] = jnp.maximum(m_sc[...], blk_max)

        @pl.when(k == pl.num_programs(1) - 1)
        def _finalize():
            m = m_sc[...]                                        # (tb, 1) f32
            # log-sigmoid + clamp hoisted AFTER the max (both monotone in x):
            #   loss = -clip(log(sigmoid(max_pos_logit)), log 1e-6, log(1-1e-6))
            # Stable softplus; the sentinel (-1e30) stays finite through it.
            logp = jnp.minimum(m, 0.0) - jnp.log1p(jnp.exp(-jnp.abs(m)))
            logp = jnp.clip(logp, _LOG_LO, _LOG_HI)
            loss_col = jnp.where(m > _NEG_BIG * 0.5, -logp, 0.0)  # 0 for no-positive rows
            loss_row = jnp.transpose(loss_col)                    # (1, tb) lane-dense, XLU
            if has_weights:
                loss_row = loss_row * w_ref[...].astype(jnp.float32)
            loss_ref[...] = loss_row

    return kernel


def _choose_tiles(B, C, x_dtype, t_dtype, budget_bytes):
    """Pick (batch_tile, class_tile) from the double-buffered-input VMEM budget.

    * class axis kept whole unless even a 256-row tile cannot fit; otherwise it
      is split into 128-multiples (real reduction grid axis + running max).
    * batch tile: full batch for small B (single block, lane-dense via the
      full-dim rule), otherwise the largest 128-multiple under the budget,
      capped so big batches give >= 2 grid steps (v7x megacore) and <= _MAX_TB.
    """
    bpe = 2 * (jnp.dtype(x_dtype).itemsize + jnp.dtype(t_dtype).itemsize)  # 2x pipeline bufs
    if C <= 128 or 256 * C * bpe <= budget_bytes:
        tc = C
    else:
        tc = max(128, min(_rdown(C, 128), _rdown(budget_bytes // (256 * bpe), 128)))

    if B < 256 and B * tc * bpe <= budget_bytes:
        return B, tc                      # one full-batch block

    tb = max(128, _rdown(budget_bytes // max(tc * bpe, 1), 128))
    half = _rdown(_rup(B, 128) // 2, 128)
    if half >= 128:                       # guarantee >= 2 batch steps when batch allows
        tb = min(tb, half)
    tb = min(tb, _MAX_TB, _rup(B, 128))
    return tb, tc


def sigmoid_loss(x, target, weights=None, aggregate='mean', tb=None, tc=None):
    """JAX/Pallas equivalent of SigmoidLoss(aggregate).forward(x, target, weights).

    Pass logits/targets in their narrowest dtype (e.g. bf16) — they are
    streamed as-is; a wrapper-side cast would just add an HBM round trip.
    """
    assert aggregate in ('sum', 'mean', None)
    B, C = x.shape
    assert target.shape == (B, C)

    vmem_cap = _vmem_capacity_bytes()
    input_budget = max(4 << 20, min(32 << 20, vmem_cap // 4))   # 16 MiB v7x / 32 MiB v5e-v6e
    vmem_limit = max(16 << 20, min(64 << 20, vmem_cap // 2))    # 32 MiB v7x / 64 MiB v5e-v6e

    tb_auto, tc_auto = _choose_tiles(B, C, x.dtype, target.dtype, input_budget)
    if tb is None:
        tb = tb_auto
    if tc is None:
        tc = tc_auto

    Bp = B if tb == B else _rup(B, tb)
    Cp = C if tc == C else _rup(C, tc)
    assert tb == Bp or tb % 128 == 0, "lane-dense output block needs tb % 128 == 0"
    assert tc == Cp or tc % 128 == 0, "class tile must be a multiple of 128"

    if Bp != B or Cp != C:
        # Zero padding: padded targets are never positive -> padded rows give 0
        # and are sliced off below.
        x = jnp.pad(x, ((0, Bp - B), (0, Cp - C)))
        target = jnp.pad(target, ((0, Bp - B), (0, Cp - C)))

    has_w = weights is not None
    x_spec = pl.BlockSpec((tb, tc), lambda i, k: (i, k))
    t_spec = pl.BlockSpec((tb, tc), lambda i, k: (i, k))
    row_spec = pl.BlockSpec((1, tb), lambda i, k: (0, i))       # lane-dense row blocks

    if has_w:
        assert weights.shape == (B,)
        w_row = weights.reshape(1, B)
        if Bp != B:
            w_row = jnp.pad(w_row, ((0, 0), (0, Bp - B)))
        operands = (x, target, w_row)
        in_specs = [x_spec, t_spec, row_spec]
    else:
        operands = (x, target)
        in_specs = [x_spec, t_spec]

    loss_row = pl.pallas_call(
        _make_kernel(has_w),
        out_shape=jax.ShapeDtypeStruct((1, Bp), jnp.float32),
        grid_spec=pltpu.PrefetchScalarGridSpec(
            num_scalar_prefetch=0,
            grid=(Bp // tb, Cp // tc),                 # reduction (class) axis last
            in_specs=in_specs,
            out_specs=row_spec,
            scratch_shapes=[pltpu.VMEM((tb, 1), jnp.float32)],   # running max
        ),
        compiler_params=pltpu.CompilerParams(
            dimension_semantics=("parallel", "arbitrary"),
            vmem_limit_bytes=vmem_limit,
        ),
    )(*operands)

    loss_vec = loss_row[0, :B]
    if aggregate == 'sum':
        return jnp.sum(loss_vec)
    if aggregate == 'mean':
        return jnp.mean(loss_vec)
    return loss_vec


def _reference(x, t, w=None):
    """Pure-JAX reference mirroring the PyTorch loop semantics (f32 math)."""
    x = x.astype(jnp.float32)
    t = t.astype(jnp.float32)
    p = jnp.clip(jax.nn.sigmoid(x), 1e-6, 1.0 - 1e-6)
    logp = jnp.log(p)
    m = jnp.max(jnp.where(t > 0, logp, -jnp.inf), axis=1)
    loss = jnp.where(t.sum(axis=1) > 0, -m, 0.0)
    if w is not None:
        loss = loss * w.astype(jnp.float32)
    return loss


if __name__ == "__main__":
    key = jax.random.PRNGKey(0)
    k1, k2, k3, k4, k5, k6, k7 = jax.random.split(key, 7)

    # --- small shapes consistent with the module (batch, num_classes) ---
    B, C = 16, 32
    x = jax.random.normal(k1, (B, C), jnp.float32)
    target = jax.random.bernoulli(k2, 0.25, (B, C)).astype(jnp.float32)
    target = target.at[0, :].set(0.0)            # exercise the "no positives" row
    weights = jax.random.uniform(k3, (B,), jnp.float32, minval=0.5, maxval=1.5)

    out_mean = sigmoid_loss(x, target, weights, aggregate='mean')
    out_sum = sigmoid_loss(x, target, weights, aggregate='sum')
    out_vec = sigmoid_loss(x, target, weights, aggregate=None)
    jax.block_until_ready((out_mean, out_sum, out_vec))

    ref_vec = _reference(x, target, weights)
    assert jnp.allclose(out_vec, ref_vec, atol=1e-4, rtol=1e-5)
    assert jnp.allclose(out_mean, ref_vec.mean(), atol=1e-4, rtol=1e-5)
    assert jnp.allclose(out_sum, ref_vec.sum(), atol=1e-4, rtol=1e-5)

    # --- multi-tile batch grid (lane-dense 128-row output blocks), no weights ---
    B2, C2 = 256, 64
    x2 = jax.random.normal(k4, (B2, C2), jnp.float32)
    t2 = jax.random.bernoulli(k5, 0.1, (B2, C2)).astype(jnp.float32)
    out2 = sigmoid_loss(x2, t2, None, aggregate=None)
    jax.block_until_ready(out2)
    assert jnp.allclose(out2, _reference(x2, t2), atol=1e-4, rtol=1e-5)

    # --- class-axis grid: running-max scratch across the reduction axis ---
    B3, C3 = 256, 256
    x3 = jax.random.normal(k6, (B3, C3), jnp.float32)
    t3 = jax.random.bernoulli(k7, 0.05, (B3, C3)).astype(jnp.float32)
    out3 = sigmoid_loss(x3, t3, None, aggregate=None, tb=128, tc=128)
    jax.block_until_ready(out3)
    assert jnp.allclose(out3, _reference(x3, t3), atol=1e-4, rtol=1e-5)

    # --- non-divisible batch: wrapper-side zero padding + weights + mean ---
    B4, C4 = 200, 32
    x4 = jax.random.normal(k1, (B4, C4), jnp.float32)
    t4 = jax.random.bernoulli(k2, 0.2, (B4, C4)).astype(jnp.float32)
    w4 = jax.random.uniform(k3, (B4,), jnp.float32, minval=0.5, maxval=1.5)
    out4 = sigmoid_loss(x4, t4, w4, aggregate='mean', tb=128)
    jax.block_until_ready(out4)
    assert jnp.allclose(out4, _reference(x4, t4, w4).mean(), atol=1e-4, rtol=1e-5)

    # --- narrow dtypes streamed as-is (bf16 logits & targets), f32 finalize ---
    x_bf16 = x.astype(jnp.bfloat16)
    t_bf16 = target.astype(jnp.bfloat16)
    out_bf16 = sigmoid_loss(x_bf16, t_bf16, weights, aggregate=None)
    jax.block_until_ready(out_bf16)
    ref_bf16 = _reference(x_bf16, t_bf16, weights)
    assert jnp.allclose(out_bf16, ref_bf16, atol=1e-4, rtol=1e-5)

    print("KERNEL_OK")
</pallas_src>

<mosaic_0001>
module attributes {stable_mosaic.version = 11 : i64} {
  func.func @kernel(%arg0: i32, %arg1: i32, %arg2: memref<16x32xf32, #tpu.memory_space<vmem>>, %arg3: memref<16x32xf32, #tpu.memory_space<vmem>>, %arg4: memref<1x16xf32, #tpu.memory_space<vmem>>, %arg5: memref<1x16xf32, #tpu.memory_space<vmem>>, %arg6: memref<16x1xf32, #tpu.memory_space<vmem>>) attributes {dimension_semantics = [#tpu.dimension_semantics<parallel>, #tpu.dimension_semantics<arbitrary>], iteration_bounds = array<i64: 1, 1>, scalar_prefetch = 0 : i64, scratch_operands = 1 : i64, tpu.core_type = #tpu.core_type<tc>, window_params = [{transform_indices = @transform_0, window_bounds = array<i64: 16, 32>}, {transform_indices = @transform_1, window_bounds = array<i64: 16, 32>}, {transform_indices = @transform_2, window_bounds = array<i64: 1, 16>}, {transform_indices = @transform_3, window_bounds = array<i64: 1, 16>}]} {
    %c0_i32 = arith.constant 0 : i32
    %0 = arith.cmpi eq, %arg1, %c0_i32 : i32
    %1 = arith.extui %0 : i1 to i32
    %c0_i32_0 = arith.constant 0 : i32
    %2 = arith.cmpi ne, %1, %c0_i32_0 : i32
    scf.if %2 {
      %cst_12 = arith.constant -1.000000e+30 : f32
      %17 = vector.broadcast %cst_12 : f32 to vector<16x1xf32>
      %c0_13 = arith.constant 0 : index
      %c0_14 = arith.constant 0 : index
      %18 = vector.load %arg6[%c0_13, %c0_14] : memref<16x1xf32, #tpu.memory_space<vmem>>, vector<16x1xf32>
      tpu.vector_store %arg6[%c0_13, %c0_14], %17 {strides = array<i32>} : memref<16x1xf32, #tpu.memory_space<vmem>>, vector<16x1xf32>,
    } else {
    }
    %c0 = arith.constant 0 : index
    %c0_1 = arith.constant 0 : index
    %3 = vector.load %arg2[%c0, %c0_1] : memref<16x32xf32, #tpu.memory_space<vmem>>, vector<16x32xf32>
    %c0_2 = arith.constant 0 : index
    %c0_3 = arith.constant 0 : index
    %4 = vector.load %arg3[%c0_2, %c0_3] : memref<16x32xf32, #tpu.memory_space<vmem>>, vector<16x32xf32>
    %cst = arith.constant 0.000000e+00 : f32
    %5 = vector.broadcast %cst : f32 to vector<16x32xf32>
    %6 = arith.cmpf ogt, %4, %5 : vector<16x32xf32>
    %cst_4 = arith.constant -1.000000e+30 : f32
    %7 = vector.broadcast %cst_4 : f32 to vector<16x32xf32>
    %8 = arith.select %6, %3, %7 : vector<16x32xi1>, vector<16x32xf32>
    %cst_5 = arith.constant dense<0xFF800000> : vector<16xf32>
    %9 = vector.multi_reduction <maximumf>, %8, %cst_5 [1] : vector<16x32xf32> to vector<16xf32>
    %10 = vector.shape_cast %9 : vector<16xf32> to vector<16x1xf32>
    %c0_6 = arith.constant 0 : index
    %c0_7 = arith.constant 0 : index
    %11 = vector.load %arg6[%c0_6, %c0_7] : memref<16x1xf32, #tpu.memory_space<vmem>>, vector<16x1xf32>
    %12 = arith.maximumf %11, %10 : vector<16x1xf32>
    %c0_8 = arith.constant 0 : index
    %c0_9 = arith.constant 0 : index
    %13 = vector.load %arg6[%c0_8, %c0_9] : memref<16x1xf32, #tpu.memory_space<vmem>>, vector<16x1xf32>
    tpu.vector_store %arg6[%c0_8, %c0_9], %12 {strides = array<i32>} : memref<16x1xf32, #tpu.memory_space<vmem>>, vector<16x1xf32>,
    %c0_i32_10 = arith.constant 0 : i32
    %14 = arith.cmpi eq, %arg1, %c0_i32_10 : i32
    %15 = arith.extui %14 : i1 to i32
    %c0_i32_11 = arith.constant 0 : i32
    %16 = arith.cmpi ne, %15, %c0_i32_11 : i32
    scf.if %16 {
      %c0_12 = arith.constant 0 : index
      %c0_13 = arith.constant 0 : index
      %17 = vector.load %arg6[%c0_12, %c0_13] : memref<16x1xf32, #tpu.memory_space<vmem>>, vector<16x1xf32>
      %cst_14 = arith.constant 0.000000e+00 : f32
      %18 = vector.broadcast %cst_14 : f32 to vector<16x1xf32>
      %19 = arith.minimumf %17, %18 : vector<16x1xf32>
      %20 = math.absf %17 : vector<16x1xf32>
      %cst_15 = arith.constant 0.000000e+00 : f32
      %21 = vector.broadcast %cst_15 : f32 to vector<16x1xf32>
      %22 = arith.subf %21, %20 : vector<16x1xf32>
      %23 = math.exp %22 : vector<16x1xf32>
      %24 = math.log1p %23 : vector<16x1xf32>
      %25 = arith.subf %19, %24 : vector<16x1xf32>
      %cst_16 = arith.constant -13.8155107 : f32
      %cst_17 = arith.constant -1.00000045E-6 : f32
      %26 = vector.broadcast %cst_16 : f32 to vector<16x1xf32>
      %27 = arith.maximumf %26, %25 : vector<16x1xf32>
      %28 = vector.broadcast %cst_17 : f32 to vector<16x1xf32>
      %29 = arith.minimumf %28, %27 : vector<16x1xf32>
      %cst_18 = arith.constant -5.000000e+29 : f32
      %30 = vector.broadcast %cst_18 : f32 to vector<16x1xf32>
      %31 = arith.cmpf ogt, %17, %30 : vector<16x1xf32>
      %cst_19 = arith.constant 0.000000e+00 : f32
      %32 = vector.broadcast %cst_19 : f32 to vector<16x1xf32>
      %33 = arith.subf %32, %29 : vector<16x1xf32>
      %cst_20 = arith.constant 0.000000e+00 : f32
      %34 = vector.broadcast %cst_20 : f32 to vector<16x1xf32>
      %35 = arith.select %31, %33, %34 : vector<16x1xi1>, vector<16x1xf32>
      %36 = tpu.transpose %35, [1, 0] : vector<16x1xf32> -> vector<1x16xf32>
      %c0_21 = arith.constant 0 : index
      %c0_22 = arith.constant 0 : index
      %37 = vector.load %arg4[%c0_21, %c0_22] : memref<1x16xf32, #tpu.memory_space<vmem>>, vector<1x16xf32>
      %38 = arith.mulf %36, %37 : vector<1x16xf32>
      %c0_23 = arith.constant 0 : index
      %c0_24 = arith.constant 0 : index
      %39 = vector.load %arg5[%c0_23, %c0_24] : memref<1x16xf32, #tpu.memory_space<vmem>>, vector<1x16xf32>
      tpu.vector_store %arg5[%c0_23, %c0_24], %38 {strides = array<i32>} : memref<1x16xf32, #tpu.memory_space<vmem>>, vector<1x16xf32>,
    } else {
    }
    return
  }
  func.func @transform_0(%arg0: i32, %arg1: i32) -> (i32, i32) {
    %c0_i32 = arith.constant 0 : i32
    return %arg0, %arg1 : i32, i32
  }
  func.func @transform_1(%arg0: i32, %arg1: i32) -> (i32, i32) {
    %c0_i32 = arith.constant 0 : i32
    return %arg0, %arg1 : i32, i32
  }
  func.func @transform_2(%arg0: i32, %arg1: i32) -> (i32, i32) {
    %c0_i32 = arith.constant 0 : i32
    %c0_i32_0 = arith.constant 0 : i32
    return %c0_i32, %arg0 : i32, i32
  }
  func.func @transform_3(%arg0: i32, %arg1: i32) -> (i32, i32) {
    %c0_i32 = arith.constant 0 : i32
    %c0_i32_0 = arith.constant 0 : i32
    return %c0_i32, %arg0 : i32, i32
  }
}

</mosaic_0001>

<bundles_post_ra>
// kernel: tpu_custom_call.1
= control target key start
LH: loop header
LB: loop body
LE: loop exit
PB: predicated region body
PF: predicated region fallthrough
CT: control target
= control target key end

     0   :  { %8 = vsyncpa [#allocation4], 0  ;;  %s325_s0 = inlined_call_operand.hbm [shape: f32[16,32], index: 0, kind: input, shape index: {}]   ;;  %s326_s1 = inlined_call_operand.hbm [shape: f32[16,32], index: 1, kind: input, shape index: {}]   ;;  %s327_s2 = inlined_call_operand.vmem [shape: f32[1,16], index: 2, kind: input, shape index: {}]   ;;  %s328_s3 = inlined_call_operand.hbm [shape: f32[1,16], index: 3, kind: output, shape index: {}]  }
   0x1   :  { %9 = vsyncpa [#allocation7], 0 }
   0x2   :  { %10 = vsyncpa [#allocation5], 0  ;;  %s256_s12 = smov [#allocation3]   ;;  %s184_s16 = scalar_lea.hbm %s325_s0, 256 }
   0x3   :  { %s16_s13 = sshll.u32 %s256_s12, 4  ;;  %p185_p0 = scmp.ne.s32.totalorder %s325_s0, %s184_s16  ;;  %s17_s13 = int_to_ptr.vmem [resolvable:$true] %s16_s13 }
   0x4   :  { %p188_p1 = scmp.lt.u32.totalorder %s184_s16, %s325_s0 }
   0x6   :  { %p190_p2 = pnand %p188_p1, %p185_p0 }
   0x8   :  { %193 = shalt.err (!%p190_p2)
}
   0x9   :  { %s194_s21 = scalar_lea.vmem %s17_s13, 256  ;;  %p199_p4 = scmp.lt.s32.totalorder %s17_s13, %s17_s13 }
   0xa   :  { %p195_p3 = scmp.ne.s32.totalorder %s17_s13, %s194_s21  ;;  %p200_p5 = scmp.lt.s32.totalorder %s194_s21, %s194_s21 }
   0xc   :  { %p201_p6 = por %p200_p5, %p199_p4 }
   0xe   :  { %p202_p7 = pnand %p201_p6, %p195_p3 }
  0x10   :  { %205 = shalt.err (!%p202_p7)
}
  0x11   :  { %s257_s22 = smov 128   ;;  %s258_s23 = smov 8  }
  0x12   :  { %22 = dma.hbm_to_vmem [thread:$0]  %s325_s0, 256, %s17_s13, [#allocation4], %s257_s22, %s257_s22, %s258_s23  }
  0x13   :  { %s259_s26 = smov [#allocation6]   ;;  %s206_s30 = scalar_lea.hbm %s326_s1, 256 }
  0x14   :  { %s28_s27 = sshll.u32 %s259_s26, 4  ;;  %p207_p8 = scmp.ne.s32.totalorder %s326_s1, %s206_s30  ;;  %s29_s27 = int_to_ptr.vmem [resolvable:$true] %s28_s27 }
  0x15   :  { %p210_p9 = scmp.lt.u32.totalorder %s206_s30, %s326_s1 }
  0x17   :  { %p212_p10 = pnand %p210_p9, %p207_p8 }
  0x19   :  { %215 = shalt.err (!%p212_p10)
}
  0x1a   :  { %s216_s8 = scalar_lea.vmem %s29_s27, 256  ;;  %p221_p12 = scmp.lt.s32.totalorder %s29_s27, %s29_s27 }
  0x1b   :  { %p217_p11 = scmp.ne.s32.totalorder %s29_s27, %s216_s8  ;;  %p222_p13 = scmp.lt.s32.totalorder %s216_s8, %s216_s8 }
  0x1d   :  { %p223_p0 = por %p222_p13, %p221_p12 }
  0x1f   :  { %p224_p1 = pnand %p223_p0, %p217_p11 }
  0x21   :  { %227 = shalt.err (!%p224_p1)
}
  0x22   :  { %34 = dma.hbm_to_vmem [thread:$0]  %s326_s1, 256, %s29_s27, [#allocation7], %s257_s22, %s257_s22, %s258_s23  }
  0x23   :  { %250 = dma.done.wait [#allocation4], 256  }
  0x24   :  { %251 = vsyncadd [#allocation4], 4294967040 }
  0x25   :  { %252 = dma.done.wait [#allocation7], 256  }
  0x26   :  { %253 = vsyncadd [#allocation7], 4294967040  ;;  %vm47_vm0 = vcmask 7168   ;;  %v260_v0 = vmov -1e+30   ;;  %v50_v1 = vld [vmem:[#allocation3] sm:$0xff] }
  0x27   :  { %48 = vst.msk [vmem:[#allocation2] sm:$0xff] %vm47_vm0, %v260_v0  ;;  %49 = vst.msk [vmem:[#allocation2 + $0x8] sm:$0xff] %vm47_vm0, %v260_v0  ;;  %v52_v2 = vld [vmem:[#allocation6] sm:$0xff]  ;;  %vm58_vm1 = vcmask 261120   ;;  %v51_v3 = vld [vmem:[#allocation3 + $0x8] sm:$0xff]  ;;  %s261_s11 = smov [#allocation8]  }
  0x28   :  { %vm54_vm2 = vcmp.gt.f32.partialorder %v52_v2, 0.0  ;;  %v53_v4 = vld [vmem:[#allocation6 + $0x8] sm:$0xff]  ;;  %v149_v53 = vld [vmem:[%s327_s2] sm:$0x1]  ;;  %s159_s12 = sshll.u32 %s261_s11, 4  ;;  %vm151_vm8 = vcmask 122880   ;;  %s160_s12 = int_to_ptr.vmem [resolvable:$true] %s159_s12 }
  0x29   :  { %v56_v5 = vsel %vm54_vm2, %v50_v1, -1e+30  ;;  %vm55_vm3 = vcmp.gt.f32.partialorder %v53_v4, 0.0  ;;  %s228_s13 = scalar_lea.vmem %s160_s12, 16  ;;  %s232_s14 = scalar_lea.vmem %s160_s12, 32 }
  0x2a   :  { %v59_v6 = vsel %vm58_vm1, %v56_v5, -inf  ;;  %v57_v7 = vsel %vm55_vm3, %v51_v3, -1e+30  ;;  %p229_p2 = scmp.ne.s32.totalorder %s160_s12, %s228_s13  ;;  %p233_p3 = scmp.lt.s32.totalorder %s160_s12, %s160_s12 }
  0x2b   :  { %60 = vmax.xlane.f32.xlu0 %v59_v6  ;;  %v62_v8 = vsel %vm58_vm1, %v57_v7, -inf  ;;  %p234_p4 = scmp.lt.s32.totalorder %s232_s14, %s228_s13 }
  0x2d   :  { %p235_p5 = por %p234_p4, %p233_p3 }
  0x2e   :  { %v65_v9 = vld [vmem:[#allocation2] sm:$0xff]  ;;  %v66_v12 = vld [vmem:[#allocation2 + $0x8] sm:$0xff] }
  0x2f   :  { %63 = vmax.xlane.f32.xlu0 %v62_v8  ;;  %p236_p6 = pnand %p235_p5, %p229_p2 }
  0xb8   :  { %v61_v10 = vpop.xlane.xlu0 %60 }
  0xb9   :  { %v67_v11 = vmax.f32 %v65_v9, %v61_v10 }
  0xbb   :  { %70 = vst.msk [vmem:[#allocation2] sm:$0xff] %vm47_vm0, %v67_v11 }
  0xbc   :  { %v64_v13 = vpop.xlane.xlu0 %63 }
  0xbd   :  { %v68_v14 = vmax.f32 %v66_v12, %v64_v13 }
  0xbf   :  { %71 = vst.msk [vmem:[#allocation2 + $0x8] sm:$0xff] %vm47_vm0, %v68_v14 }
  0xc2   :  { %v75_v15 = vld [vmem:[#allocation2] sm:$0xff] }
  0xc3   :  { %v79_v16 = vand.u32 2147483647, %v75_v15  ;;  %v77_v35 = vmin.f32 %v75_v15, 0.0  ;;  %vm111_vm6 = vcmp.gt.f32.partialorder %v75_v15, -5e+29 }
  0xc5   :  { %v81_v17 = vsub.f32 0.0, %v79_v16 }
  0xc6   :  { %v76_v18 = vld [vmem:[#allocation2 + $0x8] sm:$0xff] }
  0xc7   :  { %v83_v19 = vmul.f32 1.442695, %v81_v17  ;;  %v80_v20 = vand.u32 2147483647, %v76_v18  ;;  %v78_v43 = vmin.f32 %v76_v18, 0.0 }
  0xc8   :  { %vm112_vm7 = vcmp.gt.f32.partialorder %v76_v18, -5e+29 }
  0xc9   :  { %176 = vpow2.f32 %v83_v19  ;;  %v82_v21 = vsub.f32 0.0, %v80_v20 }
  0xcb   :  { %v85_v22 = vmul.f32 1.442695, %v82_v21 }
  0xcd   :  { %178 = vpow2.f32 %v85_v22 }
  0xd3   :  { %v177_v23 = vpop.eup %176 }
  0xd4   :  { %v87_v24 = vadd.f32 1.0, %v177_v23  ;;  %v90_v27 = vmul.f32 -0.5, %v177_v23  ;;  %v93_v30 = vand.u32 2147483647, %v177_v23 }
  0xd6   :  { %180 = vlog2.f32 %v87_v24  ;;  %v91_v28 = vadd.f32 1.0, %v90_v27  ;;  %vm94_vm4 = vcmp.lt.f32.partialorder %v93_v30, 0.0004427343 }
  0xd7   :  { %v179_v25 = vpop.eup %178 }
  0xd8   :  { %v96_v26 = vadd.f32 1.0, %v179_v25  ;;  %v99_v29 = vmul.f32 -0.5, %v179_v25  ;;  %v92_v33 = vmul.f32 %v177_v23, %v91_v28  ;;  %v102_v36 = vand.u32 2147483647, %v179_v25 }
  0xda   :  { %182 = vlog2.f32 %v96_v26  ;;  %v100_v34 = vadd.f32 1.0, %v99_v29  ;;  %vm103_vm5 = vcmp.lt.f32.partialorder %v102_v36, 0.0004427343 }
  0xdc   :  { %v101_v41 = vmul.f32 %v179_v25, %v100_v34 }
  0xe0   :  { %v181_v31 = vpop.eup %180 }
  0xe1   :  { %v89_v32 = vmul.f32 0.6931472, %v181_v31 }
  0xe3   :  { %v95_v37 = vsel %vm94_vm4, %v92_v33, %v89_v32 }
  0xe4   :  { %v183_v38 = vpop.eup %182  ;;  %v105_v39 = vsub.f32 %v77_v35, %v95_v37 }
  0xe5   :  { %v98_v40 = vmul.f32 0.6931472, %v183_v38 }
  0xe6   :  { %v107_v42 = vmax.f32 %v105_v39, -13.815511 }
  0xe7   :  { %v104_v44 = vsel %vm103_vm5, %v101_v41, %v98_v40 }
  0xe8   :  { %v109_v45 = vmin.f32 %v107_v42, -1.0000005e-06  ;;  %v106_v46 = vsub.f32 %v78_v43, %v104_v44 }
  0xea   :  { %v113_v47 = vsub.f32 0.0, %v109_v45  ;;  %v108_v48 = vmax.f32 %v106_v46, -13.815511 }
  0xec   :  { %v115_v49 = vsel %vm111_vm6, %v113_v47, 0.0  ;;  %v110_v50 = vmin.f32 %v108_v48, -1.0000005e-06 }
  0xed   :  { %117 = vxpose.xlu1.b32.start [1/2] (short) (narrow) %v115_v49, 8 }
  0xee   :  { %v114_v51 = vsub.f32 0.0, %v110_v50 }
  0xf0   :  { %v116_v52 = vsel %vm112_vm7, %v114_v51, 0.0 }
  0xf1   :  { %118 = vxpose.xlu1.b32.end [2/2] (short) (narrow) %v116_v52, 8 }
 0x16d   :  { %v133_v54 = vpop.trf.xlu1 }
 0x16e   :  { %v150_v55 = vmul.f32 %v149_v53, %v133_v54 }
 0x170   :  { %152 = vst.msk [vmem:[#allocation8] sm:$0x1] %vm151_vm8, %v150_v55 }
 0x171   :  { %239 = shalt.err (!%p236_p6)
}
 0x172   :  { %s240_s17 = scalar_lea.hbm %s328_s3, 16 }
 0x173   :  { %p241_p7 = scmp.ne.s32.totalorder %s328_s3, %s240_s17  ;;  %p244_p8 = scmp.lt.u32.totalorder %s240_s17, %s328_s3 }
 0x175   :  { %p246_p9 = pnand %p244_p8, %p241_p7 }
 0x177   :  { %249 = shalt.err (!%p246_p9)
}
 0x178   :  { %162 = dma.vmem_to_hbm [thread:$0]  %s160_s12, 16, %s328_s3, [#allocation5]  }
 0x179   :  { %254 = dma.done.wait [#allocation5], 16  }
 0x17a   :  { %255 = vsyncadd [#allocation5], 4294967280 }
 0x17b   :  { %166 = vsyncpa [#allocation4], 1 }
 0x17c   :  { %167 = vsyncpa [#allocation7], 1 }
 0x17d   :  { %168 = vsyncpa [#allocation5], 1 }

</bundles_post_ra>
